<compile_context>
chip_gen: v7x
topology: tpu7x:2x2x1
jax: 0.10.0
libtpu: 0.0.40
codegen_flags: <defaults>
</compile_context>

<pallas_src>
import jax
import jax.numpy as jnp
from jax import lax
from jax.experimental import pallas as pl
from jax.experimental.pallas import tpu as pltpu


def _round_up(n, m):
    return ((n + m - 1) // m) * m


def _cdiv(a, b):
    return -(-a // b)


def _softplus(x):
    # Numerically stable softplus (matches F.softplus to <1e-8).
    return jnp.maximum(x, 0.0) + jnp.log1p(jnp.exp(-jnp.abs(x)))


def policy_kernel(x_ref, w_ref, b_ref, out_ref):
    """One batch tile of the whole network.

    x_ref  : (TB, 129)      full input rows (129 == full last dim)
    w_ref  : (6, 128, 128)  padded weights: w1[:128], w2, w3, w4, w5, heads
    b_ref  : (8, 128)       row0 = w1[128,:], rows 1..6 = biases, row 7 = 0
    out_ref: (TB, 128)      lanes 0..7 = softplus(action)+1e-20, lane 8 = value
    """
    f32 = jnp.float32
    x = x_ref[:, :128]        # first 128 features  -> MXU
    xl = x_ref[:, 128:129]    # 129th feature       -> rank-1 VPU term
    b = b_ref[...]

    # layer 1: 129 -> 128  (K split: 128-wide MXU dot + rank-1 VPU term;
    # single MXU pass on v5e's 128-deep MXU, cheap everywhere else)
    h = jnp.dot(x, w_ref[0], preferred_element_type=f32)
    h = jnp.maximum(h + xl * b[0:1, :] + b[1:2, :], 0.0)

    # layers 2..5 (all padded to width 128; zero-padded lanes stay zero
    # because the padded weight columns / bias entries are zero and relu(0)=0)
    h = jnp.maximum(jnp.dot(h, w_ref[1], preferred_element_type=f32) + b[2:3, :], 0.0)
    h = jnp.maximum(jnp.dot(h, w_ref[2], preferred_element_type=f32) + b[3:4, :], 0.0)
    h = jnp.maximum(jnp.dot(h, w_ref[3], preferred_element_type=f32) + b[4:5, :], 0.0)
    h = jnp.maximum(jnp.dot(h, w_ref[4], preferred_element_type=f32) + b[5:6, :], 0.0)

    # merged heads: lanes 0..7 = action logits, lane 8 = value, rest padding
    head = jnp.dot(h, w_ref[5], preferred_element_type=f32) + b[6:7, :]
    lane = lax.broadcasted_iota(jnp.int32, head.shape, 1)
    out_ref[...] = jnp.where(lane < 8, _softplus(head) + 1e-20, head)


def init_params(key):
    """PyTorch-default-style init (uniform +-1/sqrt(fan_in)).

    Weights in (in_features, out_features) layout, biases as (1, out_features).
    """
    dims = [(129, 128), (128, 128), (128, 128), (128, 64), (64, 32)]
    heads = [(32, 8), (32, 1)]
    params = []
    for (fan_in, fan_out) in dims + heads:
        key, kw, kb = jax.random.split(key, 3)
        bound = 1.0 / jnp.sqrt(jnp.float32(fan_in))
        w = jax.random.uniform(kw, (fan_in, fan_out), jnp.float32, -bound, bound)
        b = jax.random.uniform(kb, (1, fan_out), jnp.float32, -bound, bound)
        params.append((w, b))
    return params  # [(w1,b1),...,(w5,b5),(wa,ba),(wv,bv)]


def pack_params(params):
    """Pack params into one (6,128,128) weight slab and one (8,128) bias pack."""
    (w1, b1), (w2, b2), (w3, b3), (w4, b4), (w5, b5), (wa, ba), (wv, bv) = params

    def pad_w(w):
        ki, ko = w.shape
        return jnp.pad(w, ((0, 128 - ki), (0, 128 - ko)))

    w1a = w1[:128, :]                       # (128, 128) -> MXU
    w1b = w1[128, :]                        # (128,)     -> rank-1 VPU term
    wh = jnp.concatenate([wa, wv], axis=1)  # (32, 9) merged heads

    w_slab = jnp.stack(
        [w1a, pad_w(w2), pad_w(w3), pad_w(w4), pad_w(w5), pad_w(wh)]
    ).astype(jnp.float32)

    def pad_b(bvec):
        v = bvec.reshape(-1)
        return jnp.pad(v, (0, 128 - v.shape[0]))

    bh = jnp.concatenate([ba.reshape(-1), bv.reshape(-1)])  # (9,)
    bias_pack = jnp.stack(
        [w1b, pad_b(b1), pad_b(b2), pad_b(b3), pad_b(b4), pad_b(b5), pad_b(bh),
         jnp.zeros((128,), jnp.float32)]
    ).astype(jnp.float32)

    return w_slab, bias_pack


def _choose_tile(B, block_b):
    """Pick a batch tile that divides the padded batch evenly and, when the
    batch is large enough to split, leaves >= 2 grid tiles (v7x megacore)."""
    n_tiles = max(_cdiv(B, block_b), 1)
    if n_tiles == 1 and B > 8:
        n_tiles = 2
    tb = _round_up(_cdiv(B, n_tiles), 8)
    bp = _round_up(B, tb)
    return tb, bp


def policy_forward(x, packed, *, block_b=2048):
    """x: (B, 129) f32 -> (action_prob (B*8,), state_values (B, 1))."""
    w_slab, bias_pack = packed
    B = x.shape[0]
    TB, Bp = _choose_tile(B, block_b)
    if Bp != B:
        x = jnp.pad(x, ((0, Bp - B), (0, 0)))  # zero rows are harmless, sliced off

    out = pl.pallas_call(
        policy_kernel,
        out_shape=jax.ShapeDtypeStruct((Bp, 128), jnp.float32),
        grid=(Bp // TB,),
        in_specs=[
            pl.BlockSpec((TB, 129), lambda i: (i, 0)),         # single fused stream
            pl.BlockSpec((6, 128, 128), lambda i: (0, 0, 0)),  # VMEM-resident weights
            pl.BlockSpec((8, 128), lambda i: (0, 0)),          # VMEM-resident biases
        ],
        out_specs=pl.BlockSpec((TB, 128), lambda i: (i, 0)),
        compiler_params=pltpu.CompilerParams(
            dimension_semantics=("parallel",)),
    )(x, w_slab, bias_pack)

    # matches `F.softplus(self.action_head(x)).reshape(-1) + 1e-20`
    action_prob = out[:B, :8].reshape(-1)
    state_values = out[:B, 8:9]
    return action_prob, state_values


def _ref_forward(x, params):
    """Pure-JAX reference of the PyTorch forward (for correctness checking)."""
    (w1, b1), (w2, b2), (w3, b3), (w4, b4), (w5, b5), (wa, ba), (wv, bv) = params
    h = jax.nn.relu(x @ w1 + b1)
    h = jax.nn.relu(h @ w2 + b2)
    h = jax.nn.relu(h @ w3 + b3)
    h = jax.nn.relu(h @ w4 + b4)
    h = jax.nn.relu(h @ w5 + b5)
    act = jax.nn.softplus(h @ wa + ba).reshape(-1) + 1e-20
    val = h @ wv + bv
    return act, val


# TODO(synk): Dirichlet sampling, get_available_vehicles and
# get_desired_distribution depend on the external `env` / torch.distributions
# and are outside the forward pass; not implemented in the kernel.

if __name__ == "__main__":
    key = jax.random.PRNGKey(0)
    key, kx = jax.random.split(key)

    B = 2
    x = jax.random.normal(kx, (B, 129), dtype=jnp.float32)

    params = init_params(key)
    packed = pack_params(params)

    action_prob, state_values = policy_forward(x, packed)
    jax.block_until_ready((action_prob, state_values))

    assert action_prob.shape == (B * 8,)
    assert state_values.shape == (B, 1)
    assert bool(jnp.all(action_prob > 0.0))

    ref_act, ref_val = _ref_forward(x, params)
    assert jnp.allclose(action_prob, ref_act, atol=1e-4, rtol=1e-4)
    assert jnp.allclose(state_values, ref_val, atol=1e-4, rtol=1e-4)

    # also exercise a multi-tile batch (uneven, > one tile) for the grid path
    B2 = 2500
    key, kx2 = jax.random.split(key)
    x2 = jax.random.normal(kx2, (B2, 129), dtype=jnp.float32)
    act2, val2 = policy_forward(x2, packed)
    jax.block_until_ready((act2, val2))
    ref_act2, ref_val2 = _ref_forward(x2, params)
    assert jnp.allclose(act2, ref_act2, atol=1e-4, rtol=1e-4)
    assert jnp.allclose(val2, ref_val2, atol=1e-4, rtol=1e-4)

    print("KERNEL_OK")
</pallas_src>

<mosaic_0001>
module attributes {stable_mosaic.version = 11 : i64} {
  func.func @policy_kernel(%arg0: i32, %arg1: memref<8x129xf32, #tpu.memory_space<vmem>>, %arg2: memref<6x128x128xf32, #tpu.memory_space<vmem>>, %arg3: memref<8x128xf32, #tpu.memory_space<vmem>>, %arg4: memref<8x128xf32, #tpu.memory_space<vmem>>) attributes {dimension_semantics = [#tpu.dimension_semantics<parallel>], iteration_bounds = array<i64: 1>, scalar_prefetch = 0 : i64, scratch_operands = 0 : i64, tpu.core_type = #tpu.core_type<tc>, window_params = [{transform_indices = @transform_0, window_bounds = array<i64: 8, 129>}, {pipeline_mode = #tpu.pipeline_mode<synchronous>, transform_indices = @transform_1, window_bounds = array<i64: 6, 128, 128>}, {pipeline_mode = #tpu.pipeline_mode<synchronous>, transform_indices = @transform_2, window_bounds = array<i64: 8, 128>}, {transform_indices = @transform_3, window_bounds = array<i64: 8, 128>}]} {
    %c0 = arith.constant 0 : index
    %c0_0 = arith.constant 0 : index
    %0 = vector.load %arg1[%c0, %c0_0] : memref<8x129xf32, #tpu.memory_space<vmem>>, vector<8x128xf32>
    %c0_1 = arith.constant 0 : index
    %c128 = arith.constant 128 : index
    %1 = vector.load %arg1[%c0_1, %c128] : memref<8x129xf32, #tpu.memory_space<vmem>>, vector<8x1xf32>
    %c0_2 = arith.constant 0 : index
    %c0_3 = arith.constant 0 : index
    %2 = vector.load %arg3[%c0_2, %c0_3] : memref<8x128xf32, #tpu.memory_space<vmem>>, vector<8x128xf32>
    %c0_4 = arith.constant 0 : index
    %c0_5 = arith.constant 0 : index
    %c0_6 = arith.constant 0 : index
    %3 = vector.load %arg2[%c0_4, %c0_5, %c0_6] : memref<6x128x128xf32, #tpu.memory_space<vmem>>, vector<1x128x128xf32>
    %4 = vector.shape_cast %3 : vector<1x128x128xf32> to vector<128x128xf32>
    %cst = arith.constant dense<0.000000e+00> : vector<8x128xf32>
    %5 = tpu.matmul %0, %4, %cst {dimension_numbers = #tpu.dot_dimension_numbers<[1], [0], [0], [1], [0, 0, 1, 1], [], []>} : vector<8x128xf32>, vector<128x128xf32>, vector<8x128xf32> -> vector<8x128xf32>
    %6 = vector.extract_strided_slice %2 {offsets = [0, 0], sizes = [1, 128], strides = [1, 1]} : vector<8x128xf32> to vector<1x128xf32>
    %7 = vector.broadcast %1 : vector<8x1xf32> to vector<8x128xf32>
    %8 = vector.broadcast %6 : vector<1x128xf32> to vector<8x128xf32>
    %9 = arith.mulf %7, %8 : vector<8x128xf32>
    %10 = arith.addf %5, %9 : vector<8x128xf32>
    %11 = vector.extract_strided_slice %2 {offsets = [1, 0], sizes = [1, 128], strides = [1, 1]} : vector<8x128xf32> to vector<1x128xf32>
    %12 = vector.broadcast %11 : vector<1x128xf32> to vector<8x128xf32>
    %13 = arith.addf %10, %12 : vector<8x128xf32>
    %cst_7 = arith.constant 0.000000e+00 : f32
    %14 = vector.broadcast %cst_7 : f32 to vector<8x128xf32>
    %15 = arith.maximumf %13, %14 : vector<8x128xf32>
    %c1 = arith.constant 1 : index
    %c0_8 = arith.constant 0 : index
    %c0_9 = arith.constant 0 : index
    %16 = vector.load %arg2[%c1, %c0_8, %c0_9] : memref<6x128x128xf32, #tpu.memory_space<vmem>>, vector<1x128x128xf32>
    %17 = vector.shape_cast %16 : vector<1x128x128xf32> to vector<128x128xf32>
    %cst_10 = arith.constant dense<0.000000e+00> : vector<8x128xf32>
    %18 = tpu.matmul %15, %17, %cst_10 {dimension_numbers = #tpu.dot_dimension_numbers<[1], [0], [0], [1], [0, 0, 1, 1], [], []>} : vector<8x128xf32>, vector<128x128xf32>, vector<8x128xf32> -> vector<8x128xf32>
    %19 = vector.extract_strided_slice %2 {offsets = [2, 0], sizes = [1, 128], strides = [1, 1]} : vector<8x128xf32> to vector<1x128xf32>
    %20 = vector.broadcast %19 : vector<1x128xf32> to vector<8x128xf32>
    %21 = arith.addf %18, %20 : vector<8x128xf32>
    %cst_11 = arith.constant 0.000000e+00 : f32
    %22 = vector.broadcast %cst_11 : f32 to vector<8x128xf32>
    %23 = arith.maximumf %21, %22 : vector<8x128xf32>
    %c2 = arith.constant 2 : index
    %c0_12 = arith.constant 0 : index
    %c0_13 = arith.constant 0 : index
    %24 = vector.load %arg2[%c2, %c0_12, %c0_13] : memref<6x128x128xf32, #tpu.memory_space<vmem>>, vector<1x128x128xf32>
    %25 = vector.shape_cast %24 : vector<1x128x128xf32> to vector<128x128xf32>
    %cst_14 = arith.constant dense<0.000000e+00> : vector<8x128xf32>
    %26 = tpu.matmul %23, %25, %cst_14 {dimension_numbers = #tpu.dot_dimension_numbers<[1], [0], [0], [1], [0, 0, 1, 1], [], []>} : vector<8x128xf32>, vector<128x128xf32>, vector<8x128xf32> -> vector<8x128xf32>
    %27 = vector.extract_strided_slice %2 {offsets = [3, 0], sizes = [1, 128], strides = [1, 1]} : vector<8x128xf32> to vector<1x128xf32>
    %28 = vector.broadcast %27 : vector<1x128xf32> to vector<8x128xf32>
    %29 = arith.addf %26, %28 : vector<8x128xf32>
    %cst_15 = arith.constant 0.000000e+00 : f32
    %30 = vector.broadcast %cst_15 : f32 to vector<8x128xf32>
    %31 = arith.maximumf %29, %30 : vector<8x128xf32>
    %c3 = arith.constant 3 : index
    %c0_16 = arith.constant 0 : index
    %c0_17 = arith.constant 0 : index
    %32 = vector.load %arg2[%c3, %c0_16, %c0_17] : memref<6x128x128xf32, #tpu.memory_space<vmem>>, vector<1x128x128xf32>
    %33 = vector.shape_cast %32 : vector<1x128x128xf32> to vector<128x128xf32>
    %cst_18 = arith.constant dense<0.000000e+00> : vector<8x128xf32>
    %34 = tpu.matmul %31, %33, %cst_18 {dimension_numbers = #tpu.dot_dimension_numbers<[1], [0], [0], [1], [0, 0, 1, 1], [], []>} : vector<8x128xf32>, vector<128x128xf32>, vector<8x128xf32> -> vector<8x128xf32>
    %35 = vector.extract_strided_slice %2 {offsets = [4, 0], sizes = [1, 128], strides = [1, 1]} : vector<8x128xf32> to vector<1x128xf32>
    %36 = vector.broadcast %35 : vector<1x128xf32> to vector<8x128xf32>
    %37 = arith.addf %34, %36 : vector<8x128xf32>
    %cst_19 = arith.constant 0.000000e+00 : f32
    %38 = vector.broadcast %cst_19 : f32 to vector<8x128xf32>
    %39 = arith.maximumf %37, %38 : vector<8x128xf32>
    %c4 = arith.constant 4 : index
    %c0_20 = arith.constant 0 : index
    %c0_21 = arith.constant 0 : index
    %40 = vector.load %arg2[%c4, %c0_20, %c0_21] : memref<6x128x128xf32, #tpu.memory_space<vmem>>, vector<1x128x128xf32>
    %41 = vector.shape_cast %40 : vector<1x128x128xf32> to vector<128x128xf32>
    %cst_22 = arith.constant dense<0.000000e+00> : vector<8x128xf32>
    %42 = tpu.matmul %39, %41, %cst_22 {dimension_numbers = #tpu.dot_dimension_numbers<[1], [0], [0], [1], [0, 0, 1, 1], [], []>} : vector<8x128xf32>, vector<128x128xf32>, vector<8x128xf32> -> vector<8x128xf32>
    %43 = vector.extract_strided_slice %2 {offsets = [5, 0], sizes = [1, 128], strides = [1, 1]} : vector<8x128xf32> to vector<1x128xf32>
    %44 = vector.broadcast %43 : vector<1x128xf32> to vector<8x128xf32>
    %45 = arith.addf %42, %44 : vector<8x128xf32>
    %cst_23 = arith.constant 0.000000e+00 : f32
    %46 = vector.broadcast %cst_23 : f32 to vector<8x128xf32>
    %47 = arith.maximumf %45, %46 : vector<8x128xf32>
    %c5 = arith.constant 5 : index
    %c0_24 = arith.constant 0 : index
    %c0_25 = arith.constant 0 : index
    %48 = vector.load %arg2[%c5, %c0_24, %c0_25] : memref<6x128x128xf32, #tpu.memory_space<vmem>>, vector<1x128x128xf32>
    %49 = vector.shape_cast %48 : vector<1x128x128xf32> to vector<128x128xf32>
    %cst_26 = arith.constant dense<0.000000e+00> : vector<8x128xf32>
    %50 = tpu.matmul %47, %49, %cst_26 {dimension_numbers = #tpu.dot_dimension_numbers<[1], [0], [0], [1], [0, 0, 1, 1], [], []>} : vector<8x128xf32>, vector<128x128xf32>, vector<8x128xf32> -> vector<8x128xf32>
    %51 = vector.extract_strided_slice %2 {offsets = [6, 0], sizes = [1, 128], strides = [1, 1]} : vector<8x128xf32> to vector<1x128xf32>
    %52 = vector.broadcast %51 : vector<1x128xf32> to vector<8x128xf32>
    %53 = arith.addf %50, %52 : vector<8x128xf32>
    %54 = tpu.iota {dimensions = array<i32: 1>} : vector<8x128xi32>
    %c8_i32 = arith.constant 8 : i32
    %55 = vector.broadcast %c8_i32 : i32 to vector<8x128xi32>
    %56 = arith.cmpi slt, %54, %55 : vector<8x128xi32>
    %cst_27 = arith.constant 0.000000e+00 : f32
    %57 = vector.broadcast %cst_27 : f32 to vector<8x128xf32>
    %58 = arith.maximumf %53, %57 : vector<8x128xf32>
    %59 = math.absf %53 : vector<8x128xf32>
    %cst_28 = arith.constant 0.000000e+00 : f32
    %60 = vector.broadcast %cst_28 : f32 to vector<8x128xf32>
    %61 = arith.subf %60, %59 : vector<8x128xf32>
    %62 = math.exp %61 : vector<8x128xf32>
    %63 = math.log1p %62 : vector<8x128xf32>
    %64 = arith.addf %58, %63 : vector<8x128xf32>
    %cst_29 = arith.constant 9.99999968E-21 : f32
    %65 = vector.broadcast %cst_29 : f32 to vector<8x128xf32>
    %66 = arith.addf %64, %65 : vector<8x128xf32>
    %67 = arith.select %56, %66, %53 : vector<8x128xi1>, vector<8x128xf32>
    %c0_30 = arith.constant 0 : index
    %c0_31 = arith.constant 0 : index
    %68 = vector.load %arg4[%c0_30, %c0_31] : memref<8x128xf32, #tpu.memory_space<vmem>>, vector<8x128xf32>
    tpu.vector_store %arg4[%c0_30, %c0_31], %67 {strides = array<i32>} : memref<8x128xf32, #tpu.memory_space<vmem>>, vector<8x128xf32>,
    return
  }
  func.func @transform_0(%arg0: i32) -> (i32, i32) {
    %c0_i32 = arith.constant 0 : i32
    %c0_i32_0 = arith.constant 0 : i32
    return %arg0, %c0_i32 : i32, i32
  }
  func.func @transform_1(%arg0: i32) -> (i32, i32, i32) {
    %c0_i32 = arith.constant 0 : i32
    %c0_i32_0 = arith.constant 0 : i32
    %c0_i32_1 = arith.constant 0 : i32
    %c0_i32_2 = arith.constant 0 : i32
    return %c0_i32, %c0_i32_0, %c0_i32_1 : i32, i32, i32
  }
  func.func @transform_2(%arg0: i32) -> (i32, i32) {
    %c0_i32 = arith.constant 0 : i32
    %c0_i32_0 = arith.constant 0 : i32
    %c0_i32_1 = arith.constant 0 : i32
    return %c0_i32, %c0_i32_0 : i32, i32
  }
  func.func @transform_3(%arg0: i32) -> (i32, i32) {
    %c0_i32 = arith.constant 0 : i32
    %c0_i32_0 = arith.constant 0 : i32
    return %arg0, %c0_i32 : i32, i32
  }
}

</mosaic_0001>

<bundles_post_ra>
// kernel: tpu_custom_call.1
= control target key start
LH: loop header
LB: loop body
LE: loop exit
PB: predicated region body
PF: predicated region fallthrough
CT: control target
= control target key end

     0   :  { %8 = vsyncpa [#allocation3], 0  ;;  %s1376_s0 = inlined_call_operand.hbm [shape: f32[8,129], index: 0, kind: input, shape index: {}]   ;;  %s1377_s1 = inlined_call_operand.hbm [shape: f32[6,128,128], index: 1, kind: input, shape index: {}]   ;;  %s1378_s2 = inlined_call_operand.hbm [shape: f32[8,128], index: 2, kind: input, shape index: {}]   ;;  %s1379_s3 = inlined_call_operand.hbm [shape: f32[8,128], index: 3, kind: output, shape index: {}]  }
   0x1   :  { %9 = vsyncpa [#allocation6], 0 }
   0x2   :  { %10 = vsyncpa [#allocation4], 0  ;;  %s1218_s12 = smov [#allocation5]   ;;  %s1124_s16 = scalar_lea.hbm %s1377_s1, 12288 }
   0x3   :  { %s26_s13 = sshll.u32 %s1218_s12, 4  ;;  %p1125_p0 = scmp.ne.s32.totalorder %s1377_s1, %s1124_s16  ;;  %s27_s13 = int_to_ptr.vmem [resolvable:$true] %s26_s13 }
   0x4   :  { %p1128_p1 = scmp.lt.u32.totalorder %s1124_s16, %s1377_s1 }
   0x6   :  { %p1130_p2 = pnand %p1128_p1, %p1125_p0 }
   0x8   :  { %1133 = shalt.err (!%p1130_p2)
}
   0x9   :  { %s1134_s21 = scalar_lea.vmem %s27_s13, 12288  ;;  %p1139_p4 = scmp.lt.s32.totalorder %s27_s13, %s27_s13 }
   0xa   :  { %p1135_p3 = scmp.ne.s32.totalorder %s27_s13, %s1134_s21  ;;  %p1140_p5 = scmp.lt.s32.totalorder %s1134_s21, %s1134_s21 }
   0xc   :  { %p1141_p6 = por %p1140_p5, %p1139_p4 }
   0xe   :  { %p1142_p7 = pnand %p1141_p6, %p1135_p3 }
  0x10   :  { %1145 = shalt.err (!%p1142_p7)
}
  0x11   :  { %s1219_s22 = smov 128   ;;  %s1220_s23 = smov 8  }
  0x12   :  { %32 = dma.hbm_to_vmem [thread:$0]  %s1377_s1, 12288, %s27_s13, [#allocation6], %s1219_s22, %s1219_s22, %s1220_s23  }
  0x13   :  { %s1221_s26 = smov [#allocation2]   ;;  %s1222_s28 = smov [#allocation7]  }
  0x14   :  { %s17_s27 = sshll.u32 %s1221_s26, 4  ;;  %s39_s29 = sshll.u32 %s1222_s28, 4  ;;  %s18_s27 = int_to_ptr.vmem [resolvable:$true] %s17_s27  ;;  %s40_s29 = int_to_ptr.vmem [resolvable:$true] %s39_s29 }
  0x15   :  { %s1146_s5 = scalar_lea.hbm %s1376_s0, 256 }
  0x16   :  { %p1147_p8 = scmp.ne.s32.totalorder %s1376_s0, %s1146_s5  ;;  %p1150_p9 = scmp.lt.u32.totalorder %s1146_s5, %s1376_s0 }
  0x18   :  { %p1152_p10 = pnand %p1150_p9, %p1147_p8 }
  0x1a   :  { %1155 = shalt.err (!%p1152_p10)
}
  0x1b   :  { %s1156_s1 = scalar_lea.vmem %s18_s27, 256  ;;  %p1161_p12 = scmp.lt.s32.totalorder %s18_s27, %s18_s27 }
  0x1c   :  { %p1157_p11 = scmp.ne.s32.totalorder %s18_s27, %s1156_s1  ;;  %p1162_p13 = scmp.lt.s32.totalorder %s1156_s1, %s1156_s1 }
  0x1e   :  { %p1163_p0 = por %p1162_p13, %p1161_p12 }
  0x20   :  { %p1164_p1 = pnand %p1163_p0, %p1157_p11 }
  0x22   :  { %1167 = shalt.err (!%p1164_p1)
}
  0x23   :  { %20 = dma.hbm_to_vmem [thread:$0]  %s1376_s0, 256, %s18_s27, [#allocation3]  }
  0x24   :  { %s1168_s14 = scalar_lea.hbm %s1378_s2, 128 }
  0x25   :  { %p1169_p2 = scmp.ne.s32.totalorder %s1378_s2, %s1168_s14  ;;  %p1172_p3 = scmp.lt.u32.totalorder %s1168_s14, %s1378_s2 }
  0x27   :  { %p1174_p4 = pnand %p1172_p3, %p1169_p2 }
  0x29   :  { %1177 = shalt.err (!%p1174_p4)
}
  0x2a   :  { %s1178_s19 = scalar_lea.vmem %s40_s29, 128  ;;  %p1183_p6 = scmp.lt.s32.totalorder %s40_s29, %s40_s29 }
  0x2b   :  { %p1179_p5 = scmp.ne.s32.totalorder %s40_s29, %s1178_s19  ;;  %p1184_p7 = scmp.lt.s32.totalorder %s1178_s19, %s1178_s19 }
  0x2d   :  { %p1185_p8 = por %p1184_p7, %p1183_p6 }
  0x2f   :  { %p1186_p9 = pnand %p1185_p8, %p1179_p5 }
  0x31   :  { %1189 = shalt.err (!%p1186_p9)
}
  0x32   :  { %42 = dma.hbm_to_vmem [thread:$0]  %s1378_s2, 128, %s40_s29, [#allocation6]  }
  0x33   :  { %1212 = dma.done.wait [#allocation3], 256  }
  0x34   :  { %1213 = vsyncadd [#allocation3], 4294967040 }
  0x35   :  { %1214 = dma.done.wait [#allocation6], 12416  }
  0x36   :  { %1215 = vsyncadd [#allocation6], 4294954880  ;;  %v1223_v0 = vmov 0.0|0.0   ;;  %vm1224_vm0 = vmmov 0   ;;  %v1225_v1 = vmov 0.0   ;;  %v1226_v2 = vmov 0  }
  0x37   :  { %965 = vmatprep.subr.bf16.mxu0 %v1223_v0  ;;  %787 = vmatprep.mubr.msk.f32.mxu0 %vm1224_vm0, %v1225_v1  ;;  %v55_v3 = vld [vmem:[#allocation5] sm:$0xff]  ;;  %v56_v4 = vld [vmem:[#allocation5 + $0x8] sm:$0xff]  ;;  %v57_v5 = vld [vmem:[#allocation5 + $0x10] sm:$0xff]  ;;  %s1227_s2 = smov [#allocation8]  }
  0x38   :  { %1119 = vset.pattern.permute.xlu0 %v1226_v2  ;;  %989 = vmatprep.subr.bf16.mxu1 %v1223_v0  ;;  %v966_v6 = vpack.c.bf16 %v56_v4, %v55_v3  ;;  %v58_v7 = vld [vmem:[#allocation5 + $0x18] sm:$0xff]  ;;  %v59_v9 = vld [vmem:[#allocation5 + $0x20] sm:$0xff]  ;;  %v60_v10 = vld [vmem:[#allocation5 + $0x28] sm:$0xff]  ;;  %s643_s21 = sshll.u32 %s1227_s2, 4  ;;  %s644_s21 = int_to_ptr.vmem [resolvable:$true] %s643_s21 }
  0x39   :  { %822 = vmatprep.mubr.msk.f32.mxu1 %vm1224_vm0, %v1225_v1  ;;  %v969_v8 = vpack.c.bf16 %v58_v7, %v57_v5  ;;  %v53_v11 = vld [vmem:[#allocation2 + $0x8] sm:$0xff]  ;;  %v158_v12 = vld [vmem:[#allocation5 + $0x80] sm:$0xff]  ;;  %v159_v13 = vld [vmem:[#allocation5 + $0x88] sm:$0xff]  ;;  %v972_v15 = vpack.c.bf16 %v60_v10, %v59_v9  ;;  %s1190_s22 = scalar_lea.vmem %s644_s21, 128  ;;  %p1195_p11 = scmp.lt.s32.totalorder %s644_s21, %s644_s21 }
  0x3a   :  { %967 = vmatpush3.bf16.msra.mxu0 %v966_v6  ;;  %73 = vperm.xlu0 %1119, %v53_v11   ;;  %v160_v14 = vld [vmem:[#allocation5 + $0x90] sm:$0xff]  ;;  %v990_v16 = vpack.c.bf16 %v159_v13, %v158_v12  ;;  %v161_v17 = vld [vmem:[#allocation5 + $0x98] sm:$0xff]  ;;  %v162_v21 = vld [vmem:[#allocation5 + $0xa0] sm:$0xff]  ;;  %v76_v12 = vlaneseq  ;;  %p1191_p10 = scmp.ne.s32.totalorder %s644_s21, %s1190_s22  ;;  %p1196_p12 = scmp.lt.s32.totalorder %s1190_s22, %s1190_s22 }
  0x3b   :  { %968 = vmatprep.subr.bf16.mxu0 %v1223_v0  ;;  %v61_v18 = vld [vmem:[#allocation5 + $0x30] sm:$0xff]  ;;  %v62_v19 = vld [vmem:[#allocation5 + $0x38] sm:$0xff]  ;;  %v993_v20 = vpack.c.bf16 %v161_v17, %v160_v14  ;;  %v163_v22 = vld [vmem:[#allocation5 + $0xa8] sm:$0xff] }
  0x3c   :  { %991 = vmatpush3.bf16.msra.mxu1 %v990_v16  ;;  %v975_v23 = vpack.c.bf16 %v62_v19, %v61_v18  ;;  %v63_v24 = vld [vmem:[#allocation5 + $0x40] sm:$0xff]  ;;  %v64_v25 = vld [vmem:[#allocation5 + $0x48] sm:$0xff]  ;;  %v996_v26 = vpack.c.bf16 %v163_v22, %v162_v21  ;;  %v164_v27 = vld [vmem:[#allocation5 + $0xb0] sm:$0xff]  ;;  %v1316_v13 = vshrl.u32 %v76_v12, 7  ;;  %p1197_p13 = por %p1196_p12, %p1195_p11 }
  0x3d   :  { %992 = vmatprep.subr.bf16.mxu1 %v1223_v0  ;;  %v165_v28 = vld [vmem:[#allocation5 + $0xb8] sm:$0xff]  ;;  %v978_v29 = vpack.c.bf16 %v64_v25, %v63_v24  ;;  %v65_v30 = vld [vmem:[#allocation5 + $0x50] sm:$0xff]  ;;  %v166_v33 = vld [vmem:[#allocation5 + $0xc0] sm:$0xff] }
  0x3e   :  { %970 = vmatpush3.bf16.msra.mxu0 %v969_v8  ;;  %v66_v31 = vld [vmem:[#allocation5 + $0x58] sm:$0xff]  ;;  %v999_v32 = vpack.c.bf16 %v165_v28, %v164_v27  ;;  %v167_v34 = vld [vmem:[#allocation5 + $0xc8] sm:$0xff]  ;;  %v67_v36 = vld [vmem:[#allocation5 + $0x60] sm:$0xff]  ;;  %v78_v14 = vsub.s32 0, %v1316_v13  ;;  %v153_v18 = vsub.s32 1, %v1316_v13  ;;  %p1198_p0 = pnand %p1197_p13, %p1191_p10 }
  0x3f   :  { %971 = vmatprep.subr.bf16.mxu0 %v1223_v0  ;;  %v981_v35 = vpack.c.bf16 %v66_v31, %v65_v30  ;;  %v68_v37 = vld [vmem:[#allocation5 + $0x68] sm:$0xff]  ;;  %v1002_v38 = vpack.c.bf16 %v167_v34, %v166_v33  ;;  %v168_v39 = vld [vmem:[#allocation5 + $0xd0] sm:$0xff]  ;;  %v169_v40 = vld [vmem:[#allocation5 + $0xd8] sm:$0xff] }
  0x40   :  { %994 = vmatpush3.bf16.msra.mxu1 %v993_v20  ;;  %v984_v41 = vpack.c.bf16 %v68_v37, %v67_v36  ;;  %v69_v42 = vld [vmem:[#allocation5 + $0x70] sm:$0xff]  ;;  %v70_v43 = vld [vmem:[#allocation5 + $0x78] sm:$0xff]  ;;  %v1005_v44 = vpack.c.bf16 %v169_v40, %v168_v39  ;;  %v170_v47 = vld [vmem:[#allocation5 + $0xe0] sm:$0xff] }
  0x41   :  { %995 = vmatprep.subr.bf16.mxu1 %v1223_v0  ;;  %v987_v45 = vpack.c.bf16 %v70_v43, %v69_v42  ;;  %v52_v46 = vld [vmem:[#allocation2] sm:$0xff]  ;;  %v171_v48 = vld [vmem:[#allocation5 + $0xe8] sm:$0xff]  ;;  %v173_v51 = vld [vmem:[#allocation5 + $0xf8] sm:$0xff] }
  0x42   :  { %973 = vmatpush3.bf16.msra.mxu0 %v972_v15  ;;  %v1008_v49 = vpack.c.bf16 %v171_v48, %v170_v47  ;;  %v172_v50 = vld [vmem:[#allocation5 + $0xf0] sm:$0xff]  ;;  %v250_v53 = vld [vmem:[#allocation5 + $0x100] sm:$0xff]  ;;  %v251_v54 = vld [vmem:[#allocation5 + $0x108] sm:$0xff] }
  0x43   :  { %974 = vmatprep.subr.bf16.mxu0 %v1223_v0  ;;  %v1011_v52 = vpack.c.bf16 %v173_v51, %v172_v50  ;;  %v252_v55 = vld [vmem:[#allocation5 + $0x110] sm:$0xff]  ;;  %v1014_v56 = vpack.c.bf16 %v251_v54, %v250_v53  ;;  %v253_v57 = vld [vmem:[#allocation5 + $0x118] sm:$0xff]  ;;  %v254_v59 = vld [vmem:[#allocation5 + $0x120] sm:$0xff]  ;;  %v176_v50 = vsub.s32 2, %v1316_v13 }
  0x44   :  { %997 = vmatpush3.bf16.msra.mxu1 %v996_v26  ;;  %v1017_v58 = vpack.c.bf16 %v253_v57, %v252_v55  ;;  %v255_v60 = vld [vmem:[#allocation5 + $0x128] sm:$0xff]  ;;  %v256_v62 = vld [vmem:[#allocation5 + $0x130] sm:$0xff]  ;;  %v257_v63 = vld [vmem:[#allocation5 + $0x138] sm:$0xff] }
  0x45   :  { %998 = vmatprep.subr.bf16.mxu1 %v1223_v0  ;;  %v1020_v61 = vpack.c.bf16 %v255_v60, %v254_v59  ;;  %v1023_v2 = vpack.c.bf16 %v257_v63, %v256_v62  ;;  %v258_v3 = vld [vmem:[#allocation5 + $0x140] sm:$0xff]  ;;  %v259_v4 = vld [vmem:[#allocation5 + $0x148] sm:$0xff]  ;;  %v260_v6 = vld [vmem:[#allocation5 + $0x150] sm:$0xff] }
  0x46   :  { %976 = vmatpush3.bf16.msra.mxu0 %v975_v23  ;;  %v1026_v5 = vpack.c.bf16 %v259_v4, %v258_v3  ;;  %v261_v7 = vld [vmem:[#allocation5 + $0x158] sm:$0xff]  ;;  %v262_v9 = vld [vmem:[#allocation5 + $0x160] sm:$0xff]  ;;  %v263_v10 = vld [vmem:[#allocation5 + $0x168] sm:$0xff] }
  0x47   :  { %977 = vmatprep.subr.bf16.mxu0 %v1223_v0  ;;  %v1029_v8 = vpack.c.bf16 %v261_v7, %v260_v6  ;;  %v1032_v11 = vpack.c.bf16 %v263_v10, %v262_v9  ;;  %v1319_v15 = vld [vmem:[#allocation7] sm:$0xff]  ;;  %v264_v26 = vld [vmem:[#allocation5 + $0x170] sm:$0xff]  ;;  %v265_v27 = vld [vmem:[#allocation5 + $0x178] sm:$0xff] }
  0x48   :  { %1000 = vmatpush3.bf16.msra.mxu1 %v999_v32  ;;  %v79_v16 = vrot.slane %v1319_v15, %v78_v14  ;;  %v154_v20 = vrot.slane %v1319_v15, %v153_v18  ;;  %v1035_v28 = vpack.c.bf16 %v265_v27, %v264_v26  ;;  %v343_v30 = vld [vmem:[#allocation5 + $0x188] sm:$0xff]  ;;  %v344_v31 = vld [vmem:[#allocation5 + $0x190] sm:$0xff]  ;;  %v345_v33 = vld [vmem:[#allocation5 + $0x198] sm:$0xff]  ;;  %v177_v51 = vrot.slane %v1319_v15, %v176_v50 }
  0x49   :  { %1001 = vmatprep.subr.bf16.mxu1 %v1223_v0  ;;  %v1041_v34 = vpack.c.bf16 %v345_v33, %v344_v31  ;;  %v347_v36 = vld [vmem:[#allocation5 + $0x1a8] sm:$0xff]  ;;  %v349_v39 = vld [vmem:[#allocation5 + $0x1b8] sm:$0xff]  ;;  %v354_v47 = vld [vmem:[#allocation5 + $0x1e0] sm:$0xff]  ;;  %v360_v50 = vsub.s32 4, %v1316_v13 }
  0x4a   :  { %979 = vmatpush3.bf16.msra.mxu0 %v978_v29  ;;  %v342_v29 = vld [vmem:[#allocation5 + $0x180] sm:$0xff]  ;;  %v351_v42 = vld [vmem:[#allocation5 + $0x1c8] sm:$0xff]  ;;  %v357_v57 = vld [vmem:[#allocation5 + $0x1f8] sm:$0xff] }
  0x4b   :  { %980 = vmatprep.subr.bf16.mxu0 %v1223_v0  ;;  %v1038_v32 = vpack.c.bf16 %v343_v30, %v342_v29  ;;  %v355_v48 = vld [vmem:[#allocation5 + $0x1e8] sm:$0xff]  ;;  %v434_v59 = vld [vmem:[#allocation5 + $0x200] sm:$0xff]  ;;  %v437_v63 = vld [vmem:[#allocation5 + $0x218] sm:$0xff] }
  0x4c   :  { %1003 = vmatpush3.bf16.msra.mxu1 %v1002_v38  ;;  %v348_v38 = vld [vmem:[#allocation5 + $0x1b0] sm:$0xff]  ;;  %v435_v60 = vld [vmem:[#allocation5 + $0x208] sm:$0xff]  ;;  %v438_v3 = vld [vmem:[#allocation5 + $0x220] sm:$0xff] }
  0x4d   :  { %1004 = vmatprep.subr.bf16.mxu1 %v1223_v0  ;;  %v1047_v40 = vpack.c.bf16 %v349_v39, %v348_v38  ;;  %v1062_v62 = vpack.c.bf16 %v435_v60, %v434_v59  ;;  %v439_v4 = vld [vmem:[#allocation5 + $0x228] sm:$0xff]  ;;  %v440_v6 = vld [vmem:[#allocation5 + $0x230] sm:$0xff]  ;;  %v441_v7 = vld [vmem:[#allocation5 + $0x238] sm:$0xff]  ;;  %v452_v59 = vsub.s32 5, %v1316_v13 }
  0x4e   :  { %982 = vmatpush3.bf16.msra.mxu0 %v981_v35  ;;  %v346_v35 = vld [vmem:[#allocation5 + $0x1a0] sm:$0xff]  ;;  %v443_v10 = vld [vmem:[#allocation5 + $0x248] sm:$0xff]  ;;  %v444_v14 = vld [vmem:[#allocation5 + $0x250] sm:$0xff] }
  0x4f   :  { %983 = vmatprep.subr.bf16.mxu0 %v1223_v0  ;;  %v1044_v37 = vpack.c.bf16 %v347_v36, %v346_v35  ;;  %v442_v9 = vld [vmem:[#allocation5 + $0x240] sm:$0xff]  ;;  %v448_v27 = vld [vmem:[#allocation5 + $0x270] sm:$0xff]  ;;  %v527_v31 = vld [vmem:[#allocation5 + $0x288] sm:$0xff]  ;;  %v453_v60 = vrot.slane %v1319_v15, %v452_v59 }
  0x50   :  { %1006 = vmatpush3.bf16.msra.mxu1 %v1005_v44  ;;  %v352_v44 = vld [vmem:[#allocation5 + $0x1d0] sm:$0xff]  ;;  %v446_v18 = vld [vmem:[#allocation5 + $0x260] sm:$0xff]  ;;  %v533_v39 = vld [vmem:[#allocation5 + $0x2b8] sm:$0xff] }
  0x51   :  { %1007 = vmatprep.subr.bf16.mxu1 %v1223_v0  ;;  %v526_v30 = vld [vmem:[#allocation5 + $0x280] sm:$0xff] }
  0x52   :  { %985 = vmatpush3.bf16.msra.mxu0 %v984_v41  ;;  %v350_v41 = vld [vmem:[#allocation5 + $0x1c0] sm:$0xff]  ;;  %v1086_v33 = vpack.c.bf16 %v527_v31, %v526_v30 }
  0x53   :  { %986 = vmatprep.subr.bf16.mxu0 %v1223_v0  ;;  %v1050_v43 = vpack.c.bf16 %v351_v42, %v350_v41  ;;  %v530_v36 = vld [vmem:[#allocation5 + $0x2a0] sm:$0xff]  ;;  %v535_v42 = vld [vmem:[#allocation5 + $0x2c8] sm:$0xff] }
  0x54   :  { %1009 = vmatpush3.bf16.msra.mxu1 %v1008_v49  ;;  %v1056_v49 = vpack.c.bf16 %v355_v48, %v354_v47  ;;  %v534_v41 = vld [vmem:[#allocation5 + $0x2c0] sm:$0xff]  ;;  %v539_v48 = vld [vmem:[#allocation5 + $0x2e8] sm:$0xff] }
  0x55   :  { %1010 = vmatprep.subr.bf16.mxu1 %v1223_v0  ;;  %v538_v47 = vld [vmem:[#allocation5 + $0x2e0] sm:$0xff] }
  0x56   :  { %988 = vmatpush3.bf16.msra.mxu0 %v987_v45  ;;  %v353_v45 = vld [vmem:[#allocation5 + $0x1d8] sm:$0xff] }
  0x57   :  { %1013 = vmatprep.subr.bf16.mxu0 %v1223_v0 }
  0x58   :  { %1012 = vmatpush3.bf16.msra.mxu1 %v1011_v52 }
  0x59   :  { %788 = vmatmul.mubr.f32.vlgmr.msra.gmra.mrb[0].mxu0 %v52_v46  ;;  %1037 = vmatprep.subr.bf16.mxu1 %v1223_v0  ;;  %v1053_v46 = vpack.c.bf16 %v353_v45, %v352_v44  ;;  %v536_v44 = vld [vmem:[#allocation5 + $0x2d0] sm:$0xff]  ;;  %v537_v45 = vld [vmem:[#allocation5 + $0x2d8] sm:$0xff] }
  0x5a   :  { %857 = vmatprep.mubr.msk.f32.mxu0 %vm1224_vm0, %v1225_v1  ;;  %1015 = vmatpush3.bf16.msra.mxu0 %v1014_v56  ;;  %v356_v56 = vld [vmem:[#allocation5 + $0x1f0] sm:$0xff] }
  0x5b   :  { %1016 = vmatprep.subr.bf16.mxu0 %v1223_v0 }
  0x5e   :  { %1018 = vmatpush3.bf16.msra.mxu0 %v1017_v58  ;;  %v1059_v58 = vpack.c.bf16 %v357_v57, %v356_v56  ;;  %v540_v56 = vld [vmem:[#allocation5 + $0x2f0] sm:$0xff]  ;;  %v541_v57 = vld [vmem:[#allocation5 + $0x2f8] sm:$0xff] }
  0x5f   :  { %1019 = vmatprep.subr.bf16.mxu0 %v1223_v0 }
  0x62   :  { %1021 = vmatpush3.bf16.msra.mxu0 %v1020_v61  ;;  %v436_v61 = vld [vmem:[#allocation5 + $0x210] sm:$0xff] }
  0x63   :  { %1022 = vmatprep.subr.bf16.mxu0 %v1223_v0 }
  0x66   :  { %1024 = vmatpush3.bf16.msra.mxu0 %v1023_v2  ;;  %v1065_v2 = vpack.c.bf16 %v437_v63, %v436_v61 }
  0x67   :  { %1025 = vmatprep.subr.bf16.mxu0 %v1223_v0 }
  0x6a   :  { %1027 = vmatpush3.bf16.msra.mxu0 %v1026_v5  ;;  %v1068_v5 = vpack.c.bf16 %v439_v4, %v438_v3 }
  0x6b   :  { %1028 = vmatprep.subr.bf16.mxu0 %v1223_v0 }
  0x6e   :  { %1030 = vmatpush3.bf16.msra.mxu0 %v1029_v8  ;;  %v1071_v8 = vpack.c.bf16 %v441_v7, %v440_v6 }
  0x6f   :  { %1031 = vmatprep.subr.bf16.mxu0 %v1223_v0 }
  0x72   :  { %1033 = vmatpush3.bf16.msra.mxu0 %v1032_v11  ;;  %v1074_v11 = vpack.c.bf16 %v443_v10, %v442_v9 }
  0x73   :  { %1034 = vmatprep.subr.bf16.mxu0 %v1223_v0 }
  0x76   :  { %1036 = vmatpush3.bf16.msra.mxu0 %v1035_v28  ;;  %v449_v28 = vld [vmem:[#allocation5 + $0x278] sm:$0xff] }
  0x77   :  { %1061 = vmatprep.subr.bf16.mxu0 %v1223_v0  ;;  %v1083_v29 = vpack.c.bf16 %v449_v28, %v448_v27 }
  0xb9   :  { %v74_v17 = vpop.permute.xlu0 %73 }
  0xba   :  { %v80_v19 = vmul.f32 %v79_v16, %v74_v17  ;;  %v445_v16 = vld [vmem:[#allocation5 + $0x258] sm:$0xff] }
  0xbb   :  { %v1077_v17 = vpack.c.bf16 %v445_v16, %v444_v14 }
 0x12c   :  { %v147_v21 = vpop.f32.mrb[0].mxu0 }
 0x12d   :  { %v148_v22 = vadd.f32 %v147_v21, %v80_v19  ;;  %v789_v23 = vpop.f32.mrb[1].mxu0  ;;  %v447_v19 = vld [vmem:[#allocation5 + $0x268] sm:$0xff]  ;;  %v268_v21 = vsub.s32 3, %v1316_v13 }
 0x12f   :  { %v155_v24 = vadd.f32 %v154_v20, %v148_v22  ;;  %v1080_v20 = vpack.c.bf16 %v447_v19, %v446_v18  ;;  %v269_v22 = vrot.slane %v1319_v15, %v268_v21 }
 0x131   :  { %v156_v25 = vmax.f32 %v155_v24, 0.0 }
 0x133   :  { %823 = vmatmul.mubr.f32.vlgmr.msra.gmra.mrb[0].mxu1 %v156_v25 }
 0x134   :  { %892 = vmatprep.mubr.msk.f32.mxu1 %vm1224_vm0, %v1225_v1  ;;  %1039 = vmatpush3.bf16.msra.mxu1 %v1038_v32  ;;  %v528_v32 = vld [vmem:[#allocation5 + $0x290] sm:$0xff] }
 0x135   :  { %1040 = vmatprep.subr.bf16.mxu1 %v1223_v0 }
 0x138   :  { %1042 = vmatpush3.bf16.msra.mxu1 %v1041_v34  ;;  %v529_v34 = vld [vmem:[#allocation5 + $0x298] sm:$0xff] }
 0x139   :  { %1043 = vmatprep.subr.bf16.mxu1 %v1223_v0  ;;  %v1089_v35 = vpack.c.bf16 %v529_v34, %v528_v32 }
 0x13c   :  { %1045 = vmatpush3.bf16.msra.mxu1 %v1044_v37  ;;  %v531_v37 = vld [vmem:[#allocation5 + $0x2a8] sm:$0xff] }
 0x13d   :  { %1046 = vmatprep.subr.bf16.mxu1 %v1223_v0  ;;  %v1092_v38 = vpack.c.bf16 %v531_v37, %v530_v36 }
 0x140   :  { %1048 = vmatpush3.bf16.msra.mxu1 %v1047_v40 }
 0x141   :  { %1049 = vmatprep.subr.bf16.mxu1 %v1223_v0 }
 0x144   :  { %1051 = vmatpush3.bf16.msra.mxu1 %v1050_v43  ;;  %v1098_v43 = vpack.c.bf16 %v535_v42, %v534_v41 }
 0x145   :  { %1052 = vmatprep.subr.bf16.mxu1 %v1223_v0 }
 0x148   :  { %1054 = vmatpush3.bf16.msra.mxu1 %v1053_v46  ;;  %v1101_v46 = vpack.c.bf16 %v537_v45, %v536_v44 }
 0x149   :  { %1055 = vmatprep.subr.bf16.mxu1 %v1223_v0 }
 0x14c   :  { %1057 = vmatpush3.bf16.msra.mxu1 %v1056_v49  ;;  %v1104_v49 = vpack.c.bf16 %v539_v48, %v538_v47 }
 0x14d   :  { %1058 = vmatprep.subr.bf16.mxu1 %v1223_v0 }
 0x150   :  { %1060 = vmatpush3.bf16.msra.mxu1 %v1059_v58  ;;  %v1107_v58 = vpack.c.bf16 %v541_v57, %v540_v56 }
 0x151   :  { %1085 = vmatprep.subr.bf16.mxu1 %v1223_v0 }
 0x206   :  { %v244_v52 = vpop.f32.mrb[0].mxu1 }
 0x207   :  { %v245_v53 = vadd.f32 %v244_v52, %v177_v51  ;;  %v824_v54 = vpop.f32.mrb[1].mxu1  ;;  %v361_v51 = vrot.slane %v1319_v15, %v360_v50 }
 0x209   :  { %v248_v55 = vmax.f32 %v245_v53, 0.0 }
 0x20b   :  { %858 = vmatmul.mubr.f32.vlgmr.msra.gmra.mrb[2].mxu0 %v248_v55 }
 0x20c   :  { %927 = vmatprep.mubr.msk.f32.mxu0 %vm1224_vm0, %v1225_v1  ;;  %1063 = vmatpush3.bf16.msra.mxu0 %v1062_v62 }
 0x20d   :  { %1064 = vmatprep.subr.bf16.mxu0 %v1223_v0 }
 0x210   :  { %1066 = vmatpush3.bf16.msra.mxu0 %v1065_v2  ;;  %v544_v2 = vsub.s32 6, %v1316_v13  ;;  %v617_v13 = vand.u32 127, %v76_v12 }
 0x211   :  { %1067 = vmatprep.subr.bf16.mxu0 %v1223_v0 }
 0x212   :  { %v545_v3 = vrot.slane %v1319_v15, %v544_v2  ;;  %vm618_vm2 = vcmp.lt.s32.totalorder %v617_v13, 8 }
 0x214   :  { %1069 = vmatpush3.bf16.msra.mxu0 %v1068_v5 }
 0x215   :  { %1070 = vmatprep.subr.bf16.mxu0 %v1223_v0 }
 0x218   :  { %1072 = vmatpush3.bf16.msra.mxu0 %v1071_v8 }
 0x219   :  { %1073 = vmatprep.subr.bf16.mxu0 %v1223_v0 }
 0x21c   :  { %1075 = vmatpush3.bf16.msra.mxu0 %v1074_v11 }
 0x21d   :  { %1076 = vmatprep.subr.bf16.mxu0 %v1223_v0 }
 0x220   :  { %1078 = vmatpush3.bf16.msra.mxu0 %v1077_v17 }
 0x221   :  { %1079 = vmatprep.subr.bf16.mxu0 %v1223_v0 }
 0x224   :  { %1081 = vmatpush3.bf16.msra.mxu0 %v1080_v20 }
 0x225   :  { %1082 = vmatprep.subr.bf16.mxu0 %v1223_v0 }
 0x228   :  { %1084 = vmatpush3.bf16.msra.mxu0 %v1083_v29 }
 0x2de   :  { %v336_v23 = vpop.f32.mrb[2].mxu0 }
 0x2df   :  { %v337_v24 = vadd.f32 %v336_v23, %v269_v22  ;;  %v859_v25 = vpop.f32.mrb[3].mxu0 }
 0x2e1   :  { %v340_v26 = vmax.f32 %v337_v24, 0.0 }
 0x2e3   :  { %893 = vmatmul.mubr.f32.vlgmr.msra.gmra.mrb[2].mxu1 %v340_v26 }
 0x2e4   :  { %962 = vmatprep.mubr.msk.f32.mxu1 %vm1224_vm0, %v1225_v1  ;;  %1087 = vmatpush3.bf16.msra.mxu1 %v1086_v33  ;;  %v532_v1 = vld [vmem:[#allocation5 + $0x2b0] sm:$0xff] }
 0x2e5   :  { %1088 = vmatprep.subr.bf16.mxu1 %v1223_v0  ;;  %v1095_v40 = vpack.c.bf16 %v533_v39, %v532_v1 }
 0x2e8   :  { %1090 = vmatpush3.bf16.msra.mxu1 %v1089_v35 }
 0x2e9   :  { %1091 = vmatprep.subr.bf16.mxu1 %v1223_v0 }
 0x2ec   :  { %1093 = vmatpush3.bf16.msra.mxu1 %v1092_v38 }
 0x2ed   :  { %1094 = vmatprep.subr.bf16.mxu1 %v1223_v0 }
 0x2f0   :  { %1096 = vmatpush3.bf16.msra.mxu1 %v1095_v40 }
 0x2f1   :  { %1097 = vmatprep.subr.bf16.mxu1 %v1223_v0 }
 0x2f4   :  { %1099 = vmatpush3.bf16.msra.mxu1 %v1098_v43 }
 0x2f5   :  { %1100 = vmatprep.subr.bf16.mxu1 %v1223_v0 }
 0x2f8   :  { %1102 = vmatpush3.bf16.msra.mxu1 %v1101_v46 }
 0x2f9   :  { %1103 = vmatprep.subr.bf16.mxu1 %v1223_v0 }
 0x2fc   :  { %1105 = vmatpush3.bf16.msra.mxu1 %v1104_v49 }
 0x2fd   :  { %1106 = vmatprep.subr.bf16.mxu1 %v1223_v0 }
 0x300   :  { %1108 = vmatpush3.bf16.msra.mxu1 %v1107_v58 }
 0x3b6   :  { %v428_v52 = vpop.f32.mrb[2].mxu1 }
 0x3b7   :  { %v429_v53 = vadd.f32 %v428_v52, %v361_v51  ;;  %v894_v54 = vpop.f32.mrb[3].mxu1 }
 0x3b9   :  { %v432_v55 = vmax.f32 %v429_v53, 0.0 }
 0x3bb   :  { %928 = vmatmul.mubr.f32.vlgmr.msra.gmra.mrb[4].mxu0 %v432_v55 }
 0x48e   :  { %v520_v61 = vpop.f32.mrb[4].mxu0 }
 0x48f   :  { %v521_v62 = vadd.f32 %v520_v61, %v453_v60  ;;  %v929_v0 = vpop.f32.mrb[5].mxu0 }
 0x491   :  { %v524_v63 = vmax.f32 %v521_v62, 0.0 }
 0x493   :  { %963 = vmatmul.mubr.f32.vlgmr.msra.gmra.mrb[4].mxu1 %v524_v63 }
 0x566   :  { %v612_v4 = vpop.f32.mrb[4].mxu1 }
 0x567   :  { %v613_v5 = vadd.f32 %v612_v4, %v545_v3  ;;  %v964_v6 = vpop.f32.mrb[5].mxu1 }
 0x569   :  { %v620_v7 = vand.u32 2147483647, %v613_v5  ;;  %v619_v21 = vmax.f32 %v613_v5, 0.0 }
 0x56b   :  { %v621_v8 = vsub.f32 0.0, %v620_v7 }
 0x56d   :  { %v622_v9 = vmul.f32 1.442695, %v621_v8 }
 0x56f   :  { %1120 = vpow2.f32 %v622_v9 }
 0x579   :  { %v1121_v10 = vpop.eup %1120 }
 0x57a   :  { %v624_v11 = vadd.f32 1.0, %v1121_v10  ;;  %v627_v14 = vmul.f32 -0.5, %v1121_v10  ;;  %v630_v17 = vand.u32 2147483647, %v1121_v10 }
 0x57c   :  { %1122 = vlog2.f32 %v624_v11  ;;  %v628_v16 = vadd.f32 1.0, %v627_v14  ;;  %vm631_vm1 = vcmp.lt.f32.partialorder %v630_v17, 0.0004427343 }
 0x57e   :  { %v629_v20 = vmul.f32 %v1121_v10, %v628_v16 }
 0x586   :  { %v1123_v18 = vpop.eup %1122 }
 0x587   :  { %v626_v19 = vmul.f32 0.6931472, %v1123_v18 }
 0x589   :  { %v632_v15 = vsel %vm631_vm1, %v629_v20, %v626_v19 }
 0x58a   :  { %v633_v22 = vadd.f32 %v632_v15, %v619_v21 }
 0x58c   :  { %v634_v23 = vadd.f32 1e-20, %v633_v22 }
 0x58e   :  { %v635_v24 = vsel %vm618_vm2, %v634_v23, %v613_v5 }
 0x58f   :  { %636 = vst [vmem:[#allocation8] sm:$0xff] %v635_v24 }
 0x590   :  { %1201 = shalt.err (!%p1198_p0)
}
 0x591   :  { %s1202_s25 = scalar_lea.hbm %s1379_s3, 128 }
 0x592   :  { %p1203_p1 = scmp.ne.s32.totalorder %s1379_s3, %s1202_s25  ;;  %p1206_p2 = scmp.lt.u32.totalorder %s1202_s25, %s1379_s3 }
 0x594   :  { %p1208_p3 = pnand %p1206_p2, %p1203_p1 }
 0x596   :  { %1211 = shalt.err (!%p1208_p3)
}
 0x597   :  { %646 = dma.vmem_to_hbm [thread:$0]  %s644_s21, 128, %s1379_s3, [#allocation4]  }
 0x598   :  { %1216 = dma.done.wait [#allocation4], 128  }
 0x599   :  { %1217 = vsyncadd [#allocation4], 4294967168 }
 0x59a   :  { %650 = vsyncpa [#allocation3], 1 }
 0x59b   :  { %651 = vsyncpa [#allocation6], 1 }
 0x59c   :  { %652 = vsyncpa [#allocation4], 1 }

</bundles_post_ra>
